<compile_context>
chip_gen: v7x
topology: tpu7x:2x2x1
jax: 0.10.0
libtpu: 0.0.40
codegen_flags: <defaults>
</compile_context>

<pallas_src>
import functools

import numpy as np
import jax
import jax.numpy as jnp
from jax.experimental import pallas as pl
from jax.experimental.pallas import tpu as pltpu


# --------------------------------------------------------------------------- #
# Host-side helpers
# --------------------------------------------------------------------------- #
def _round_up(v, m):
    return ((v + m - 1) // m) * m


def _pick_tile(dim, target, align):
    """Largest tile <= target that divides dim and is a multiple of `align`,
    else the full dim (full-dim blocks are always legal)."""
    if dim <= target:
        return dim
    d = (target // align) * align
    while d >= align:
        if dim % d == 0:
            return d
        d -= align
    return dim


def _pick_c_tile(batch, channels, target):
    c_tile = _pick_tile(channels, target, 128)
    # v7x megacore: with B == 1 make sure the channel grid axis feeds both TCs.
    if batch == 1 and c_tile == channels and channels % 256 == 0:
        c_tile = channels // 2
    return c_tile


def _band_matrix(o_rows, w_rows, kernel_size, pad, pad_a, dtype):
    """0/1 band matrix for the tiled stride-1 path.  Column c of the window
    scratch holds global row (tile_start + c - pad_a); replicate padding lives
    physically in the scratch, so one matrix serves every tile."""
    t = np.arange(o_rows)[:, None]
    c = np.arange(w_rows)[None, :]
    lo = pad_a + t - pad
    m = ((c >= lo) & (c < lo + kernel_size)).astype(np.float32)
    return jnp.asarray(m, dtype=dtype)


def _full_pool_matrix(out_len, seq_len, kernel_size, stride, pad, dtype):
    """Integer-count pooling matrix with replicate padding folded in (general
    path).  Entries are small integers -> exact even in bf16."""
    rows = np.repeat(np.arange(out_len), kernel_size)
    cols = np.clip(
        np.arange(out_len)[:, None] * stride - pad + np.arange(kernel_size)[None, :],
        0, seq_len - 1).ravel()
    m = np.zeros((out_len, seq_len), np.float32)
    np.add.at(m, (rows, cols), 1.0)
    return jnp.asarray(m, dtype=dtype)


# --------------------------------------------------------------------------- #
# Kernels
# --------------------------------------------------------------------------- #
def _moving_avg_tiled_kernel(m_ref, x_ref, o_ref, w_ref, *,
                             l_tile, pad_a, halo_a, n_l, inv_k):
    """stride == 1 path.  Grid L-axis has n_l + 1 steps; step i loads input tile
    min(i, n_l - 1) and (for i >= 1) computes output tile j = i - 1 from the
    persistent window scratch:
        w[0 : pad_a]                  back halo (tail of tile j-1 / x[0] replicated)
        w[pad_a : pad_a + l_tile]     tile j
        w[pad_a + l_tile : w_rows]    forward halo (head of tile j+1 / x[L-1] replicated)
    Every scratch row is written before its first use -> no stale-VMEM reads.
    """
    i = pl.program_id(2)
    cur = x_ref[...]                              # (l_tile, c_tile)

    @pl.when(i == 0)
    def _init():
        # Back halo <- x[0] replicated: this *is* the replicate padding of tile 0.
        first = cur[0:1, :]
        w_ref[pl.ds(0, pad_a), :] = jnp.broadcast_to(first, (pad_a,) + first.shape[1:])
        w_ref[pl.ds(pad_a, l_tile), :] = cur

    @pl.when((i >= 1) & (i <= n_l - 1))
    def _fill_forward():
        # Forward halo <- head of the next input tile.
        w_ref[pl.ds(pad_a + l_tile, halo_a), :] = cur[:halo_a, :]

    @pl.when(i == n_l)
    def _fill_forward_last():
        # Forward halo of the last tile <- x[L-1] replicated (replicate padding).
        last = cur[l_tile - 1:l_tile, :]
        w_ref[pl.ds(pad_a + l_tile, halo_a), :] = jnp.broadcast_to(
            last, (halo_a,) + last.shape[1:])

    @pl.when(i >= 1)
    def _compute():
        m = m_ref[...]
        w = w_ref[...]
        if w.dtype != m.dtype:                    # only for exotic input dtypes
            w = w.astype(m.dtype)
        acc = jnp.dot(m, w, preferred_element_type=jnp.float32)
        o_ref[...] = (acc * inv_k).astype(o_ref.dtype)

    @pl.when((i >= 1) & (i <= n_l - 1))
    def _shift():
        # Next output tile's back halo = last pad_a rows of the tile currently
        # resident (read before it is overwritten), then tile j+1 moves in.
        tail = w_ref[pl.ds(l_tile, pad_a), :]
        w_ref[pl.ds(0, pad_a), :] = tail
        w_ref[pl.ds(pad_a, l_tile), :] = cur


def _moving_avg_full_kernel(m_ref, x_ref, o_ref, *, inv_k):
    """General path (stride != 1, even kernel_size, or L too small to tile):
    whole L per grid step, replicate padding folded into the pooling matrix."""
    m = m_ref[...]
    xb = x_ref[...]
    if xb.dtype != m.dtype:
        xb = xb.astype(m.dtype)
    acc = jnp.dot(m, xb, preferred_element_type=jnp.float32)
    o_ref[...] = (acc * inv_k).astype(o_ref.dtype)


# --------------------------------------------------------------------------- #
# Wrapper
# --------------------------------------------------------------------------- #
def moving_avg(x: jax.Array, kernel_size: int, stride: int, *,
               l_tile_target: int = 128, c_tile_target: int = 2048) -> jax.Array:
    """Pallas-TPU equivalent of the PyTorch `moving_avg` module.  x: (B, L, C)."""
    B, L, C = x.shape
    kernel_size = int(kernel_size)
    stride = int(stride)
    pad = (kernel_size - 1) // 2
    out_len = (L + 2 * pad - kernel_size) // stride + 1
    if out_len <= 0:
        raise ValueError("kernel_size too large for this sequence length")

    # bf16 operands go straight to the MXU; everything else accumulates from f32.
    op_dtype = jnp.bfloat16 if x.dtype == jnp.bfloat16 else jnp.float32
    sub_align = 8 if jnp.dtype(x.dtype).itemsize >= 4 else 16
    inv_k = 1.0 / kernel_size
    vmem_limit = 48 * 1024 * 1024      # headroom on v7x (64 MiB physical VMEM)

    halo = kernel_size - 1 - pad
    pad_a = _round_up(max(pad, 1), sub_align)
    halo_a = _round_up(max(halo, 1), sub_align)
    l_tile = _pick_tile(L, l_tile_target, sub_align)

    use_tiled = (stride == 1 and kernel_size >= 3 and kernel_size % 2 == 1
                 and pad_a <= l_tile and halo_a <= l_tile)

    if use_tiled:
        # ---------------- tiled stride-1 path (the real decomposition case) ----
        c_tile = _pick_c_tile(B, C, c_tile_target)
        n_c = C // c_tile
        n_l = L // l_tile
        w_rows = pad_a + l_tile + halo_a
        m = _band_matrix(l_tile, w_rows, kernel_size, pad, pad_a, op_dtype)
        kernel = functools.partial(
            _moving_avg_tiled_kernel,
            l_tile=l_tile, pad_a=pad_a, halo_a=halo_a, n_l=n_l, inv_k=inv_k)
        return pl.pallas_call(
            kernel,
            out_shape=jax.ShapeDtypeStruct((B, L, C), x.dtype),
            grid_spec=pltpu.PrefetchScalarGridSpec(
                num_scalar_prefetch=0,
                grid=(B, n_c, n_l + 1),
                in_specs=[
                    # Tiny band matrix: constant block index -> fetched once, resident.
                    pl.BlockSpec((l_tile, w_rows), lambda b, c, i: (0, 0)),
                    pl.BlockSpec((None, l_tile, c_tile),
                                 lambda b, c, i: (b, jnp.minimum(i, n_l - 1), c)),
                ],
                out_specs=pl.BlockSpec((None, l_tile, c_tile),
                                       lambda b, c, i: (b, jnp.maximum(i - 1, 0), c)),
                scratch_shapes=[pltpu.VMEM((w_rows, c_tile), x.dtype)],
            ),
            compiler_params=pltpu.CompilerParams(
                dimension_semantics=("parallel", "parallel", "arbitrary"),
                vmem_limit_bytes=vmem_limit),
        )(m, x)

    # ---------------- general path (stride != 1, even kernel, tiny L) ----------
    # TODO(synk): for very large L this path should also be tiled along out_len
    # (the (out_len, L) pooling matrix and the full-L input block grow with L);
    # the common series-decomposition case (odd kernel, stride 1) never hits it.
    item = jnp.dtype(x.dtype).itemsize
    per_chan_bytes = (2 * L + 2 * out_len) * item          # double-buffered in/out
    budget = 24 * 1024 * 1024
    max_c = max(128, (budget // max(per_chan_bytes, 1)) // 128 * 128)
    c_tile = _pick_c_tile(B, C, min(c_tile_target, max_c))
    n_c = C // c_tile
    m = _full_pool_matrix(out_len, L, kernel_size, stride, pad, op_dtype)
    kernel = functools.partial(_moving_avg_full_kernel, inv_k=inv_k)
    return pl.pallas_call(
        kernel,
        out_shape=jax.ShapeDtypeStruct((B, out_len, C), x.dtype),
        grid_spec=pltpu.PrefetchScalarGridSpec(
            num_scalar_prefetch=0,
            grid=(B, n_c),
            in_specs=[
                pl.BlockSpec((out_len, L), lambda b, c: (0, 0)),
                pl.BlockSpec((None, L, c_tile), lambda b, c: (b, 0, c)),
            ],
            out_specs=pl.BlockSpec((None, out_len, c_tile), lambda b, c: (b, 0, c)),
        ),
        compiler_params=pltpu.CompilerParams(
            dimension_semantics=("parallel", "parallel"),
            vmem_limit_bytes=vmem_limit),
    )(m, x)


# --------------------------------------------------------------------------- #
# Pure-JAX reference (matches the PyTorch module) and self-test
# --------------------------------------------------------------------------- #
def _moving_avg_ref(x, kernel_size, stride):
    pad = (kernel_size - 1) // 2
    front = jnp.repeat(x[:, :1, :], pad, axis=1)
    end = jnp.repeat(x[:, -1:, :], pad, axis=1)
    xp = jnp.concatenate([front, x, end], axis=1).astype(jnp.float32)
    out_len = (xp.shape[1] - kernel_size) // stride + 1
    cs = jnp.concatenate([jnp.zeros_like(xp[:, :1, :]),
                          jnp.cumsum(xp, axis=1)], axis=1)
    starts = jnp.arange(out_len) * stride
    win = jnp.take(cs, starts + kernel_size, axis=1) - jnp.take(cs, starts, axis=1)
    return win / kernel_size


if __name__ == "__main__":
    key = jax.random.PRNGKey(0)
    configs = [
        # (B,   L,   C, kernel, stride, dtype,        l_tile_target, tol)
        (2,   96, 128,     25,      1, jnp.float32,              32, 1e-4),  # tiled, 3 L-tiles
        (2,    8,  32,      5,      1, jnp.float32,             128, 1e-4),  # tiled, single tile, tiny
        (1,  240, 256,     25,      1, jnp.float32,             128, 1e-4),  # tiled, C split for 2 TCs
        (2,   96, 128,     25,      1, jnp.bfloat16,             32, 3e-2),  # tiled, bf16 MXU operands
        (2,   16,  32,      4,      2, jnp.float32,             128, 1e-4),  # general: even k, stride 2
    ]
    for idx, (B, L, C, k, s, dt, lt, tol) in enumerate(configs):
        key, sub = jax.random.split(key)
        x = jax.random.normal(sub, (B, L, C), dtype=jnp.float32).astype(dt)
        out = jax.block_until_ready(moving_avg(x, k, s, l_tile_target=lt))
        ref = _moving_avg_ref(x.astype(jnp.float32), k, s)
        assert out.shape == ref.shape, (idx, out.shape, ref.shape)
        err = float(jnp.max(jnp.abs(out.astype(jnp.float32) - ref)))
        assert err <= tol, ("mismatch in config", idx, err)
    print("KERNEL_OK")
</pallas_src>

<mosaic_0001>
module attributes {stable_mosaic.version = 11 : i64} {
  func.func @_moving_avg_tiled_kernel(%arg0: i32, %arg1: i32, %arg2: i32, %arg3: memref<32x64xf32, #tpu.memory_space<vmem>>, %arg4: memref<1x32x128xf32, #tpu.memory_space<vmem>>, %arg5: memref<1x32x128xf32, #tpu.memory_space<vmem>>, %arg6: memref<64x128xf32, #tpu.memory_space<vmem>>) attributes {dimension_semantics = [#tpu.dimension_semantics<parallel>, #tpu.dimension_semantics<parallel>, #tpu.dimension_semantics<arbitrary>], iteration_bounds = array<i64: 2, 1, 4>, scalar_prefetch = 0 : i64, scratch_operands = 1 : i64, tpu.core_type = #tpu.core_type<tc>, window_params = [{pipeline_mode = #tpu.pipeline_mode<synchronous>, transform_indices = @transform_0, window_bounds = array<i64: 32, 64>}, {transform_indices = @transform_1, window_bounds = array<i64: 1, 32, 128>}, {transform_indices = @transform_2, window_bounds = array<i64: 1, 32, 128>}]} {
    %c0 = arith.constant 0 : index
    %c0_0 = arith.constant 0 : index
    %c0_1 = arith.constant 0 : index
    %0 = vector.load %arg4[%c0, %c0_0, %c0_1] : memref<1x32x128xf32, #tpu.memory_space<vmem>>, vector<1x32x128xf32>
    %1 = vector.shape_cast %0 : vector<1x32x128xf32> to vector<32x128xf32>
    %c0_i32 = arith.constant 0 : i32
    %2 = arith.cmpi eq, %arg2, %c0_i32 : i32
    %3 = arith.extui %2 : i1 to i32
    %c0_i32_2 = arith.constant 0 : i32
    %4 = arith.cmpi ne, %3, %c0_i32_2 : i32
    scf.if %4 {
      %21 = vector.extract_strided_slice %1 {offsets = [0, 0], sizes = [1, 128], strides = [1, 1]} : vector<32x128xf32> to vector<1x128xf32>
      %22 = vector.shape_cast %21 : vector<1x128xf32> to vector<1x128xf32>
      %23 = vector.broadcast %22 : vector<1x128xf32> to vector<16x128xf32>
      %c0_10 = arith.constant 0 : index
      %c0_11 = arith.constant 0 : index
      %24 = vector.load %arg6[%c0_10, %c0_11] : memref<64x128xf32, #tpu.memory_space<vmem>>, vector<16x128xf32>
      tpu.vector_store %arg6[%c0_10, %c0_11], %23 {strides = array<i32>} : memref<64x128xf32, #tpu.memory_space<vmem>>, vector<16x128xf32>,
      %c16 = arith.constant 16 : index
      %c0_12 = arith.constant 0 : index
      %25 = vector.load %arg6[%c16, %c0_12] : memref<64x128xf32, #tpu.memory_space<vmem>>, vector<32x128xf32>
      tpu.vector_store %arg6[%c16, %c0_12], %1 {strides = array<i32>} : memref<64x128xf32, #tpu.memory_space<vmem>>, vector<32x128xf32>,
    } else {
    }
    %c1_i32 = arith.constant 1 : i32
    %5 = arith.cmpi sge, %arg2, %c1_i32 : i32
    %c2_i32 = arith.constant 2 : i32
    %6 = arith.cmpi sle, %arg2, %c2_i32 : i32
    %7 = arith.andi %5, %6 : i1
    %8 = arith.extui %7 : i1 to i32
    %c0_i32_3 = arith.constant 0 : i32
    %9 = arith.cmpi ne, %8, %c0_i32_3 : i32
    scf.if %9 {
      %21 = vector.extract_strided_slice %1 {offsets = [0, 0], sizes = [16, 128], strides = [1, 1]} : vector<32x128xf32> to vector<16x128xf32>
      %c48 = arith.constant 48 : index
      %c0_10 = arith.constant 0 : index
      %22 = vector.load %arg6[%c48, %c0_10] : memref<64x128xf32, #tpu.memory_space<vmem>>, vector<16x128xf32>
      tpu.vector_store %arg6[%c48, %c0_10], %21 {strides = array<i32>} : memref<64x128xf32, #tpu.memory_space<vmem>>, vector<16x128xf32>,
    } else {
    }
    %c3_i32 = arith.constant 3 : i32
    %10 = arith.cmpi eq, %arg2, %c3_i32 : i32
    %11 = arith.extui %10 : i1 to i32
    %c0_i32_4 = arith.constant 0 : i32
    %12 = arith.cmpi ne, %11, %c0_i32_4 : i32
    scf.if %12 {
      %21 = vector.extract_strided_slice %1 {offsets = [31, 0], sizes = [1, 128], strides = [1, 1]} : vector<32x128xf32> to vector<1x128xf32>
      %22 = vector.shape_cast %21 : vector<1x128xf32> to vector<1x128xf32>
      %23 = vector.broadcast %22 : vector<1x128xf32> to vector<16x128xf32>
      %c48 = arith.constant 48 : index
      %c0_10 = arith.constant 0 : index
      %24 = vector.load %arg6[%c48, %c0_10] : memref<64x128xf32, #tpu.memory_space<vmem>>, vector<16x128xf32>
      tpu.vector_store %arg6[%c48, %c0_10], %23 {strides = array<i32>} : memref<64x128xf32, #tpu.memory_space<vmem>>, vector<16x128xf32>,
    } else {
    }
    %c1_i32_5 = arith.constant 1 : i32
    %13 = arith.cmpi sge, %arg2, %c1_i32_5 : i32
    %14 = arith.extui %13 : i1 to i32
    %c0_i32_6 = arith.constant 0 : i32
    %15 = arith.cmpi ne, %14, %c0_i32_6 : i32
    scf.if %15 {
      %c0_10 = arith.constant 0 : index
      %c0_11 = arith.constant 0 : index
      %21 = vector.load %arg3[%c0_10, %c0_11] : memref<32x64xf32, #tpu.memory_space<vmem>>, vector<32x64xf32>
      %c0_12 = arith.constant 0 : index
      %c0_13 = arith.constant 0 : index
      %22 = vector.load %arg6[%c0_12, %c0_13] : memref<64x128xf32, #tpu.memory_space<vmem>>, vector<64x128xf32>
      %cst = arith.constant dense<0.000000e+00> : vector<32x128xf32>
      %23 = tpu.matmul %21, %22, %cst {dimension_numbers = #tpu.dot_dimension_numbers<[1], [0], [0], [1], [0, 0, 1, 1], [], []>} : vector<32x64xf32>, vector<64x128xf32>, vector<32x128xf32> -> vector<32x128xf32>
      %cst_14 = arith.constant 4.000000e-02 : f32
      %24 = vector.broadcast %cst_14 : f32 to vector<32x128xf32>
      %25 = arith.mulf %23, %24 : vector<32x128xf32>
      %c0_15 = arith.constant 0 : index
      %c0_16 = arith.constant 0 : index
      %c0_17 = arith.constant 0 : index
      %26 = vector.load %arg5[%c0_15, %c0_16, %c0_17] : memref<1x32x128xf32, #tpu.memory_space<vmem>>, vector<1x32x128xf32>
      %27 = vector.shape_cast %26 : vector<1x32x128xf32> to vector<32x128xf32>
      %28 = vector.shape_cast %25 : vector<32x128xf32> to vector<1x32x128xf32>
      tpu.vector_store %arg5[%c0_15, %c0_16, %c0_17], %28 {strides = array<i32>} : memref<1x32x128xf32, #tpu.memory_space<vmem>>, vector<1x32x128xf32>,
    } else {
    }
    %c1_i32_7 = arith.constant 1 : i32
    %16 = arith.cmpi sge, %arg2, %c1_i32_7 : i32
    %c2_i32_8 = arith.constant 2 : i32
    %17 = arith.cmpi sle, %arg2, %c2_i32_8 : i32
    %18 = arith.andi %16, %17 : i1
    %19 = arith.extui %18 : i1 to i32
    %c0_i32_9 = arith.constant 0 : i32
    %20 = arith.cmpi ne, %19, %c0_i32_9 : i32
    scf.if %20 {
      %c32 = arith.constant 32 : index
      %c0_10 = arith.constant 0 : index
      %21 = vector.load %arg6[%c32, %c0_10] : memref<64x128xf32, #tpu.memory_space<vmem>>, vector<16x128xf32>
      %c0_11 = arith.constant 0 : index
      %c0_12 = arith.constant 0 : index
      %22 = vector.load %arg6[%c0_11, %c0_12] : memref<64x128xf32, #tpu.memory_space<vmem>>, vector<16x128xf32>
      tpu.vector_store %arg6[%c0_11, %c0_12], %21 {strides = array<i32>} : memref<64x128xf32, #tpu.memory_space<vmem>>, vector<16x128xf32>,
      %c16 = arith.constant 16 : index
      %c0_13 = arith.constant 0 : index
      %23 = vector.load %arg6[%c16, %c0_13] : memref<64x128xf32, #tpu.memory_space<vmem>>, vector<32x128xf32>
      tpu.vector_store %arg6[%c16, %c0_13], %1 {strides = array<i32>} : memref<64x128xf32, #tpu.memory_space<vmem>>, vector<32x128xf32>,
    } else {
    }
    return
  }
  func.func @transform_0(%arg0: i32, %arg1: i32, %arg2: i32) -> (i32, i32) {
    %c0_i32 = arith.constant 0 : i32
    %c0_i32_0 = arith.constant 0 : i32
    %c0_i32_1 = arith.constant 0 : i32
    return %c0_i32, %c0_i32_0 : i32, i32
  }
  func.func @transform_1(%arg0: i32, %arg1: i32, %arg2: i32) -> (i32, i32, i32) {
    %c2_i32 = arith.constant 2 : i32
    %0 = arith.minsi %arg2, %c2_i32 : i32
    %c0_i32 = arith.constant 0 : i32
    return %arg0, %0, %arg1 : i32, i32, i32
  }
  func.func @transform_2(%arg0: i32, %arg1: i32, %arg2: i32) -> (i32, i32, i32) {
    %c1_i32 = arith.constant 1 : i32
    %0 = arith.subi %arg2, %c1_i32 : i32
    %c0_i32 = arith.constant 0 : i32
    %1 = arith.maxsi %0, %c0_i32 : i32
    %c0_i32_0 = arith.constant 0 : i32
    return %arg0, %1, %arg1 : i32, i32, i32
  }
}

</mosaic_0001>

<bundles_post_ra>
// kernel: tpu_custom_call.1
= control target key start
LH: loop header
LB: loop body
LE: loop exit
PB: predicated region body
PF: predicated region fallthrough
CT: control target
= control target key end

     0   :  { %s1258_s0 = inlined_call_operand.hbm [shape: f32[32,64], index: 0, kind: input, shape index: {}]   ;;  %s1259_s1 = inlined_call_operand.hbm [shape: f32[2,96,128], index: 1, kind: input, shape index: {}]   ;;  %s1260_s2 = inlined_call_operand.hbm [shape: f32[2,96,128], index: 2, kind: output, shape index: {}]  }
   0x1   :  { %1274 = sst [smem:[#allocation19_spill]] %s1258_s0 }
   0x2   :  { %7 = vsyncpa [#allocation4], 0 }
   0x3   :  { %8 = vsyncpa [#allocation7], 0 }
   0x4   :  { %10 = vsyncpa [#allocation7 + $0x1], 0 }
   0x5   :  { %11 = vsyncpa [#allocation5], 0 }
   0x6   :  { %13 = vsyncpa [#allocation5 + $0x1], 0  ;;  %s932_s9 = smov 0   ;;  %s934_s10 = smov 0  }
   0x7   :  { %s936_s11 = smov 0   ;;  %s938_s12 = smov 0  }
   0x8   :  { %s940_s13 = smov 0   ;;  %s942_s14 = smov 0  }
   0x9   :  { %s944_s15 = smov 0   ;;  %s946_s16 = smov 0  }
   0xa   :  { %s948_s17 = smov 0   ;;  %s950_s18 = smov 0  }
   0xb   :  { %s952_s19 = smov 0  }
   0xc LB: > { %1275 = sst [smem:[#allocation12_spill]] %s868_s9  ;;  %s520_s20 = sadd.s32 4294967295, %s908_s19   ;;  %s908_s19 = sphi %s952_s19, %s19_s19   ;;  %s904_s18 = sphi %s950_s18, %s1313_s18   ;;  %s900_s17 = sphi %s948_s17, %s1305_s17   ;;  %s896_s16 = sphi %s946_s16, %s1312_s16   ;;  %s892_s15 = sphi %s944_s15, %s1304_s15   ;;  %s888_s14 = sphi %s942_s14, %s1303_s14   ;;  %s884_s13 = sphi %s940_s13, %s1311_s13   ;;  %s880_s12 = sphi %s938_s12, %s1310_s12   ;;  %s876_s11 = sphi %s936_s11, %s1309_s11   ;;  %s872_s10 = sphi %s934_s10, %s1308_s10   ;;  %s868_s9 = sphi %s932_s9, %s1307_s9  }
   0xd   : > { %1276 = sst [smem:[#allocation13_spill]] %s888_s14  ;;  %s521_s21 = sadd.s32 4294967294, %s908_s19  }
   0xe   : > { %1277 = sst [smem:[#allocation14_spill]] %s900_s17  ;;  %p87_p0 = scmp.ne.s32.totalorder %s884_s13, %s880_s12 }
   0xf   : > { %p988_p1 = scmp.eq.s32.totalorder %s520_s20, 0  ;;  %p120_p2 = scmp.ne.s32.totalorder %s876_s11, %s872_s10 }
  0x10   : > { %p121_p4 = scmp.eq.s32.totalorder %s520_s20, 7  ;;  %p126_p5 = scmp.ne.s32.totalorder %s872_s10, %s868_s9 }
  0x11   : > { %s1278_s22 = scalar_select %p988_p1, 1, 0 }
  0x12   : > { %p997_p3 = por %p988_p1, %p87_p0  ;;  %p127_p6 = scmp.eq.s32.totalorder %s521_s21, 7 }
  0x13   : > { %p1003_p7 = por %p121_p4, %p120_p2  ;;  %p524_p8 = scmp.ge.s32.totalorder %s908_s19, 1 }
  0x14   : > { %s1279_s24 = scalar_select %p997_p3, 1, 0 }
  0x15   : > { %s1280_s25 = scalar_select %p1003_p7, 1, 0 }
  0x16   : > { %p1008_p9 = por %p127_p6, %p126_p5  ;;  %p134_p10 = scmp.lt.s32.totalorder %s908_s19, 9 }
  0x17   : > { %s910_s28 = smov [#allocation3]   ;;  %s1285_s0 = sld [smem:[#allocation19_spill]] }
  0x18   : > { %s1281_s26 = scalar_select %p1008_p9, 1, 0 }
  0x19   : > { %p1013_p11 = pnand %p524_p8, %p134_p10  ;;  %s146_s29 = sshll.u32 %s910_s28, 4  ;;  %s147_s29 = int_to_ptr.vmem [resolvable:$true] %s146_s29 }
  0x1a   : > { %1282 = sst [smem:[#allocation15_spill]] %s1281_s26 }
  0x1b   : > { %s1283_s27 = scalar_select %p1013_p11, 1, 0 }
  0x1c   : > { %p615_p12 = pneg %p1013_p11 }
  0x1d   : > { %s724_s5 = scalar_lea.hbm %s1285_s0, 512 }
  0x1e   : > { %p1021_p13 = pnand %p615_p12, %p988_p1  ;;  %p725_p0 = scmp.ne.s32.totalorder %s1285_s0, %s724_s5 }
  0x1f   : > { %p731_p6 = scmp.lt.u32.totalorder %s724_s5, %s1285_s0 }
  0x20   : > { %p726_p2 = pneg %p1021_p13 }
  0x22   : > { %p727_p4 = pnand %p726_p2, %p725_p0 }
  0x24   : > { %p728_p5 = pneg %p727_p4 }
  0x26   : > { %p733_p8 = pnand %p731_p6, %p728_p5 }
  0x28   : > { %736 = shalt.err (!%p733_p8)
}
  0x29   : > { %s737_s20 = scalar_lea.vmem %s147_s29, 512  ;;  %p745_p7 = scmp.lt.s32.totalorder %s147_s29, %s147_s29 }
  0x2a   : > { %p738_p10 = scmp.ne.s32.totalorder %s147_s29, %s737_s20  ;;  %p746_p3 = scmp.lt.s32.totalorder %s737_s20, %s737_s20 }
  0x2c   : > { %p740_p12 = pnand %p738_p10, %p726_p2  ;;  %p747_p1 = por %p746_p3, %p745_p7 }
  0x2e   : > { %p741_p9 = pneg %p740_p12 }
  0x30   : > { %p748_p11 = pnand %p747_p1, %p741_p9 }
  0x32   : > { %751 = shalt.err (!%p748_p11)
}
  0x33   : > { %s1266_s21 = smov 128   ;;  %s1267_s28 = smov 8  }
  0x34   : > { %618 = dma.hbm_to_vmem [thread:$0]  (!%p1021_p13), %s1285_s0, 512, %s147_s29, [#allocation4], %s1266_s21, %s1266_s21, %s1267_s28  }
  0x35   : > { %s31_s5 = sadd.s32 1, %s900_s17  ;;  %s38_s6 = sadd.s32 1, %s904_s18 }
  0x36   : > { %p32_p1 = scmp.ge.s32.totalorder %s31_s5, 4  ;;  %p63_p3 = scmp.lt.s32.totalorder %s900_s17, 2 }
  0x37   : > { %s74_s7 = sadd.s32 1, %s888_s14  ;;  %p81_p11 = scmp.ne.s32.totalorder %s888_s14, %s884_s13 }
  0x38   : > { %s1315_s5 = smov (%p32_p1, %s31_s5), 0  ;;  %s1317_s6 = smov (!%p32_p1, %s38_s6), %s904_s18 }
  0x39   : > { %1286 = sst [smem:[#allocation16_spill]] %s1315_s5  ;;  %p40_p7 = scmp.ge.s32.totalorder %s1317_s6, 2 }
  0x3a   : > { %s1052_s30 = scalar_select %p63_p3, %s900_s17, 2 }
  0x3b   : > { %p65_p9 = scmp.lt.s32.totalorder %s1315_s5, 2  ;;  %p82_p13 = scmp.eq.s32.totalorder %s908_s19, 0 }
  0x3c   : > { %s1319_s6 = smov (%p40_p7, %s1317_s6), 0  ;;  %s522_s3 = sadd.s32 4294967295, %s900_s17 }
  0x3d   : > { %1287 = sst [smem:[#allocation17_spill]] %s1319_s6  ;;  %s67_s8 = ssub.s32 %s904_s18, %s1319_s6 }
  0x3e   : > { %s66_s29 = scalar_select %p65_p9, %s1315_s5, 2 }
  0x3f   : > { %p1063_p0 = por %p82_p13, %p81_p11  ;;  %p98_p2 = scmp.gt.s32.totalorder %s522_s3, 0 }
  0x40   : > { %s68_s20 = ssub.s32 %s1052_s30, %s66_s29  ;;  %s523_s21 = sadd.s32 4294967295, %s1315_s5 }
  0x41   : > { %s69_s4 = sor.u32 %s68_s20, %s67_s8  ;;  %s1321_s3 = smov (!%p98_p2, %s522_s3), 0 }
  0x42   : > { %p72_p4 = scmp.eq.s32.totalorder %s69_s4, 0  ;;  %p101_p5 = scmp.gt.s32.totalorder %s523_s21, 0 }
  0x43   : > { %p628_p6 = scmp.lt.s32.totalorder %s908_s19, 8  ;;  %s160_s23 = sand.u32 1, %s888_s14  }
  0x44   : > { %s1071_s28 = scalar_select %p72_p4, %s888_s14, %s74_s7  }
  0x45   : > { %s528_s0 = sshll.u32 %s1052_s30, 2  ;;  %s1323_s21 = smov (!%p101_p5, %s523_s21), 0 }
  0x46   : > { %1289 = sst [smem:[#allocation18_spill]] %s1071_s28  ;;  %s527_s6 = sshll.u32 %s160_s23, 5 }
  0x47   : > { %s104_s29 = ssub.s32 %s1321_s3, %s1323_s21  ;;  %s605_s17 = smul.u32 12, %s904_s18 }
  0x48   : > { %s105_s26 = sor.u32 %s104_s29, %s67_s8  ;;  %s164_s20 = scalar_lea.vmem [#allocation6], %s527_s6 }
  0x49   : > { %p108_p8 = scmp.eq.s32.totalorder %s105_s26, 0  ;;  %s176_s4 = sshll.u32 %s164_s20, 4  ;;  %s1077_s4 = int_to_ptr.vmem [resolvable:$true] %s176_s4 }
  0x4a   : > { %s173_s5 = sadd.s32 %s605_s17, %s528_s0  ;;  %s1290_s9 = sadd.s32 1, %s876_s11 }
  0x4b   : > { %s1082_s7 = scalar_select %p108_p8, %s876_s11, %s1290_s9  }
  0x4c   : > { %s529_s28 = sshll.u32 %s173_s5, 7  ;;  %p1088_p10 = pnand %p628_p6, %p1063_p0 }
  0x4d   : > { %s1095_s26 = scalar_lea.hbm %s1259_s1, %s529_s28  ;;  %s1097_s0 = scalar_lea.sflag [#allocation7], %s160_s23 }
  0x4e   : > { %s752_s9 = scalar_lea.hbm %s1095_s26, 512  ;;  %p754_p1 = pneg %p1088_p10 }
  0x4f   : > { %p753_p12 = scmp.ne.s32.totalorder %s1095_s26, %s752_s9  ;;  %s757_s6 = scalar_lea.hbm %s1259_s1, 3072 }
  0x50   : > { %p758_p9 = scmp.lt.u32.totalorder %s1095_s26, %s1259_s1  ;;  %p759_p11 = scmp.lt.u32.totalorder %s757_s6, %s752_s9 }
  0x51   : > { %p755_p3 = pnand %p754_p1, %p753_p12  ;;  %p761_p0 = scmp.lt.u32.totalorder %s752_s9, %s1095_s26 }
  0x52   : > { %p760_p13 = por %p759_p11, %p758_p9 }
  0x53   : > { %p756_p7 = pneg %p755_p3 }
  0x54   : > { %p762_p2 = por %p761_p0, %p760_p13 }
  0x56   : > { %p763_p4 = pnand %p762_p2, %p756_p7 }
  0x58   : > { %766 = shalt.err (!%p763_p4)
}
  0x59   : > { %s767_s23 = scalar_lea.vmem %s1077_s4, 512  ;;  %s913_s12 = smov [#allocation6]  }
  0x5a   : > { %p768_p5 = scmp.ne.s32.totalorder %s1077_s4, %s767_s23  ;;  %s772_s3 = sshll.u32 %s913_s12, 4  ;;  %s773_s3 = int_to_ptr.vmem [resolvable:$false] %s772_s3 }
  0x5b   : > { %s774_s29 = scalar_lea.vmem %s773_s3, 1024  ;;  %p775_p12 = scmp.lt.s32.totalorder %s1077_s4, %s773_s3 }
  0x5c   : > { %p770_p6 = pnand %p768_p5, %p754_p1  ;;  %p776_p3 = scmp.lt.s32.totalorder %s774_s29, %s767_s23 }
  0x5e   : > { %p771_p8 = pneg %p770_p6  ;;  %p777_p9 = por %p776_p3, %p775_p12 }
  0x60   : > { %p778_p11 = pnand %p777_p9, %p771_p8 }
  0x62   : > { %781 = shalt.err (!%p778_p11)
}
  0x63   : > { %s1292_s20 = smov 8   ;;  %s1293_s30 = smov 128  }
  0x64   : > { %622 = dma.hbm_to_vmem [thread:$0]  (!%p1088_p10), %s1095_s26, 512, %s1077_s4, %s1097_s0, %s1293_s30, %s1293_s30, %s1292_s20  }
  0x65   : > { %p1294_p1 = scmp.ne.s32.totalorder %s1283_s27, 0 }
  0x66   : > { %p1295_p7 = scmp.ne.s32.totalorder (!%p1294_p1), %s1278_s22, 0 }
  0x67   : > { %188 = sbr.rel (%p1294_p1) target bundleno = 418 (0x1a2), region = 28 }
  0x6e   : > { %855 = dma.done.wait (%p1295_p7), [#allocation4], 512  }
  0x6f   : > { %857 = vsyncadd (%p1295_p7), [#allocation4], 4294966784  ;;  %s194_s21 = sand.u32 1, %s884_s13   ;;  %p1296_p13 = scmp.ne.s32.totalorder %s1279_s24, 0 }
  0x70   : > { %s532_s14 = sshll.u32 %s194_s21, 5  ;;  %s195_s9 = scalar_lea.sflag [#allocation7], %s194_s21 }
  0x71   : > { %s198_s17 = scalar_lea.vmem [#allocation6], %s532_s14 }
  0x72   : > { %859 = dma.done.wait (%p1296_p13), %s195_s9, 512  }
  0x73   : > { %861 = vsyncadd (%p1296_p13), %s195_s9, 4294966784  ;;  %s216_s27 = sand.u32 1, %s872_s10   ;;  %v1142_v0 = vld [vmem:[%s198_s17] sm:$0xff]  ;;  %v1144_v1 = vld [vmem:[%s198_s17 + $0x8] sm:$0xff]  ;;  %p534_p10 = scmp.ne.s32.totalorder %s892_s15, 0 }
  0x74   : > { %s533_s4 = sshll.u32 %s216_s27, 5  ;;  %v1146_v2 = vld [vmem:[%s198_s17 + $0x10] sm:$0xff]  ;;  %v1148_v3 = vld [vmem:[%s198_s17 + $0x18] sm:$0xff]  ;;  %v234_v4 = vlaneseq (!%p534_p10)  ;;  %240 = vst [vmem:[#allocation2 + $0x10] sm:$0xff] (!%p534_p10), %v1142_v0  ;;  %241 = vst [vmem:[#allocation2 + $0x18] sm:$0xff] (!%p534_p10), %v1144_v1 }
  0x75   : > { %s1150_s22 = scalar_lea.vmem [#allocation8], %s533_s4  ;;  %233 = sbr.rel (%p534_p10) target bundleno = 125 (0x7d), region = 40  ;;  %242 = vst [vmem:[#allocation2 + $0x20] sm:$0xff] (!%p534_p10), %v1146_v2  ;;  %243 = vst [vmem:[#allocation2 + $0x28] sm:$0xff] (!%p534_p10), %v1148_v3 }
  0x76   : > { %v235_v5 = vshrl.u32 (!%p534_p10), %v234_v4, 7 }
  0x78   : > { %v236_v6 = vsub.s32 (!%p534_p10), 0, %v235_v5 }
  0x7a   : > { %v237_v7 = vrot.slane (!%p534_p10), %v1142_v0, %v236_v6 }
  0x7c   : > { %238 = vst [vmem:[#allocation2] sm:$0xff] %v237_v7  ;;  %239 = vst [vmem:[#allocation2 + $0x8] sm:$0xff] %v237_v7 }
  0x7d PF: > { %p244_p0 = scmp.ge.s32.totalorder %s892_s15, 1  ;;  %p245_p2 = scmp.le.s32.totalorder %s892_s15, 2 }
  0x7f   : > { %p1160_p4 = pnand %p245_p2, %p244_p0 }
  0x80   : > { %250 = vst [vmem:[#allocation2 + $0x30] sm:$0xff] (!%p1160_p4), %v1142_v0  ;;  %251 = vst [vmem:[#allocation2 + $0x38] sm:$0xff] (!%p1160_p4), %v1144_v1 }
  0x81   : > { %249 = sbr.rel (%p1160_p4) target bundleno = 136 (0x88), region = 44 }
  0x88 PF: > { %p535_p5 = scmp.ne.s32.totalorder %s892_s15, 3 }
  0x89   : > { %v256_v8 = vlaneseq (!%p535_p5) }
  0x8a   : > { %255 = sbr.rel (%p535_p5) target bundleno = 146 (0x92), region = 48 }
  0x8b   : > { %v257_v9 = vshrl.u32 (!%p535_p5), %v256_v8, 7 }
  0x8d   : > { %v258_v10 = vsub.s32 (!%p535_p5), 7, %v257_v9 }
  0x8f   : > { %v259_v11 = vrot.slane (!%p535_p5), %v1148_v3, %v258_v10 }
  0x91   : > { %260 = vst [vmem:[#allocation2 + $0x30] sm:$0xff] %v259_v11  ;;  %261 = vst [vmem:[#allocation2 + $0x38] sm:$0xff] %v259_v11 }
  0x92 PF: > { %p536_p6 = scmp.lt.s32.totalorder %s892_s15, 1 }
  0x93   : > { %v269_v12 = vld [vmem:[#allocation2] sm:$0xff] (!%p536_p6)  ;;  %v270_v13 = vld [vmem:[#allocation2 + $0x8] sm:$0xff] (!%p536_p6)  ;;  %v271_v14 = vld [vmem:[#allocation2 + $0x10] sm:$0xff] (!%p536_p6)  ;;  %vm277_vm0 = vcmask (!%p536_p6), 523264  }
  0x94   : > { %264 = sbr.rel (%p536_p6) target bundleno = 382 (0x17e), region = 52  ;;  %v581_v15 = vpack.c.bf16 (!%p536_p6), %v270_v13, %v269_v12  ;;  %v272_v16 = vld [vmem:[#allocation2 + $0x18] sm:$0xff] (!%p536_p6)  ;;  %v273_v18 = vld [vmem:[#allocation2 + $0x20] sm:$0xff] (!%p536_p6)  ;;  %v274_v19 = vld [vmem:[#allocation2 + $0x28] sm:$0xff] (!%p536_p6) }
  0x95   : > { %v585_v17 = vpack.c.bf16 (!%p536_p6), %v272_v16, %v271_v14  ;;  %v265_v20 = vld [vmem:[#allocation3] sm:$0xff] (!%p536_p6)  ;;  %v267_v21 = vld [vmem:[#allocation3 + $0x10] sm:$0xff] (!%p536_p6)  ;;  %v589_v22 = vpack.c.bf16 (!%p536_p6), %v274_v19, %v273_v18  ;;  %v266_v26 = vld [vmem:[#allocation3 + $0x8] sm:$0xff] (!%p536_p6) }
  0x96   : > { %582 = vmatprep.subr.bf16.mxu0 (!%p536_p6), %v581_v15  ;;  %597 = vmatprep.subr.bf16.mxu1 (!%p536_p6), %v581_v15  ;;  %v268_v27 = vld [vmem:[#allocation3 + $0x18] sm:$0xff] (!%p536_p6) }
  0x97   : > { %584 = vmatpush3.bf16.msra.mxu0 (!%p536_p6), %v581_v15  ;;  %601 = vmatpush3.bf16.msra.mxu1 (!%p536_p6), %v581_v15 }
  0x98   : > { %586 = vmatprep.subr.bf16.mxu0 (!%p536_p6), %v585_v17  ;;  %598 = vmatprep.subr.bf16.mxu1 (!%p536_p6), %v585_v17  ;;  %v275_v23 = vld [vmem:[#allocation2 + $0x30] sm:$0xff] (!%p536_p6)  ;;  %v276_v24 = vld [vmem:[#allocation2 + $0x38] sm:$0xff] (!%p536_p6) }
  0x99   : > { %575 = vmatprep.mubr.msk.f32.mxu0 (!%p536_p6), %vm277_vm0, %v265_v20  ;;  %578 = vmatprep.mubr.msk.f32.mxu1 (!%p536_p6), %vm277_vm0, %v267_v21  ;;  %v593_v25 = vpack.c.bf16 (!%p536_p6), %v276_v24, %v275_v23 }
  0x9b   : > { %588 = vmatpush3.bf16.msra.mxu0 %v585_v17  ;;  %602 = vmatpush3.bf16.msra.mxu1 %v585_v17 }
  0x9c   : > { %590 = vmatprep.subr.bf16.mxu0 %v589_v22  ;;  %599 = vmatprep.subr.bf16.mxu1 %v589_v22 }
  0x9f   : > { %592 = vmatpush3.bf16.msra.mxu0 %v589_v22  ;;  %603 = vmatpush3.bf16.msra.mxu1 %v589_v22 }
  0xa0   : > { %594 = vmatprep.subr.bf16.mxu0 %v593_v25  ;;  %600 = vmatprep.subr.bf16.mxu1 %v593_v25 }
  0xa3   : > { %596 = vmatpush3.bf16.msra.mxu0 %v593_v25  ;;  %604 = vmatpush3.bf16.msra.mxu1 %v593_v25 }
  0xa6   : > { %576 = vmatmul.mubr.msk.f32.vlgmr.msra.gmra.mrb[0].mxu0 %vm277_vm0, %v266_v26  ;;  %579 = vmatmul.mubr.msk.f32.vlgmr.msra.gmra.mrb[0].mxu1 %vm277_vm0, %v268_v27 }
 0x179   : > { %v577_v28 = vpop.f32.mrb[0].mxu0  ;;  %v580_v29 = vpop.f32.mrb[0].mxu1 }
 0x17a   : > { %v376_v30 = vmul.f32 0.04, %v577_v28  ;;  %v378_v31 = vmul.f32 0.04, %v580_v29  ;;  %v356_v32 = vpop.f32.mrb[1].mxu0  ;;  %v366_v33 = vpop.f32.mrb[1].mxu1 }
 0x17b   : > { %v375_v34 = vmul.f32 0.04, %v356_v32  ;;  %v377_v35 = vmul.f32 0.04, %v366_v33 }
 0x17c   : > { %380 = vst [vmem:[%s1150_s22 + $0x8] sm:$0xff] %v376_v30  ;;  %382 = vst [vmem:[%s1150_s22 + $0x18] sm:$0xff] %v378_v31 }
 0x17d   : > { %379 = vst [vmem:[%s1150_s22] sm:$0xff] %v375_v34  ;;  %381 = vst [vmem:[%s1150_s22 + $0x10] sm:$0xff] %v377_v35 }
 0x17e PF: > { %384 = sbr.rel (%p1160_p4) target bundleno = 389 (0x185), region = 56  ;;  %v385_v36 = vld [vmem:[#allocation2 + $0x20] sm:$0xff] (!%p1160_p4)  ;;  %v386_v37 = vld [vmem:[#allocation2 + $0x28] sm:$0xff] (!%p1160_p4)  ;;  %389 = vst [vmem:[#allocation2 + $0x10] sm:$0xff] (!%p1160_p4), %v1142_v0  ;;  %390 = vst [vmem:[#allocation2 + $0x18] sm:$0xff] (!%p1160_p4), %v1144_v1 }
 0x17f   : > { %387 = vst [vmem:[#allocation2] sm:$0xff] (!%p1160_p4), %v385_v36  ;;  %391 = vst [vmem:[#allocation2 + $0x20] sm:$0xff] (!%p1160_p4), %v1146_v2 }
 0x180   : > { %388 = vst [vmem:[#allocation2 + $0x8] sm:$0xff] (!%p1160_p4), %v386_v37  ;;  %392 = vst [vmem:[#allocation2 + $0x28] sm:$0xff] (!%p1160_p4), %v1148_v3 }
 0x185 PF: > { %s542_s26 = sadd.s32 4294967295, %s892_s15  ;;  %s606_s0 = smul.u32 12, %s896_s16 }
 0x186   : > { %p402_p8 = scmp.gt.s32.totalorder %s542_s26, 0  ;;  %s413_s5 = sshll.u32 %s1150_s22, 4  ;;  %s1188_s5 = int_to_ptr.vmem [resolvable:$true] %s413_s5 }
 0x187   : > { %s1197_s29 = scalar_lea.sflag [#allocation5], %s216_s27  ;;  %s782_s15 = scalar_lea.vmem %s1188_s5, 512 }
 0x188   : > { %s1325_s26 = smov (!%p402_p8, %s542_s26), 0  ;;  %p783_p12 = scmp.ne.s32.totalorder %s1188_s5, %s782_s15 }
 0x189   : > { %s543_s6 = sshll.u32 %s1325_s26, 2  ;;  %p1298_p3 = scmp.ne.s32.totalorder %s1280_s25, 0 }
 0x18a   : > { %s410_s28 = sadd.s32 %s606_s0, %s543_s6  ;;  %s914_s16 = smov [#allocation8]  }
 0x18b   : > { %s544_s8 = sshll.u32 %s410_s28, 7  ;;  %p784_p9 = pnand %p783_p12, %p1298_p3 }
 0x18c   : > { %s1193_s3 = scalar_lea.hbm %s1260_s2, %s544_s8  ;;  %s786_s20 = sshll.u32 %s914_s16, 4  ;;  %s787_s20 = int_to_ptr.vmem [resolvable:$false] %s786_s20 }
 0x18d   : > { %p785_p11 = pneg %p784_p9  ;;  %s788_s30 = scalar_lea.vmem %s787_s20, 1024 }
 0x18e   : > { %p789_p1 = scmp.lt.s32.totalorder %s1188_s5, %s787_s20  ;;  %p790_p7 = scmp.lt.s32.totalorder %s788_s30, %s782_s15 }
 0x190   : > { %p791_p13 = por %p790_p7, %p789_p1 }
 0x192   : > { %p792_p10 = pnand %p791_p13, %p785_p11 }
 0x194   : > { %795 = shalt.err (!%p792_p10)
}
 0x195   : > { %s796_s21 = scalar_lea.hbm %s1193_s3, 512  ;;  %s800_s17 = scalar_lea.hbm %s1260_s2, 3072 }
 0x196   : > { %p797_p0 = scmp.ne.s32.totalorder %s1193_s3, %s796_s21  ;;  %p801_p5 = scmp.lt.u32.totalorder %s1193_s3, %s1260_s2 }
 0x197   : > { %p802_p6 = scmp.lt.u32.totalorder %s800_s17, %s796_s21  ;;  %p804_p12 = scmp.lt.u32.totalorder %s796_s21, %s1193_s3 }
 0x198   : > { %p798_p2 = pnand %p797_p0, %p1298_p3 }
 0x199   : > { %p803_p8 = por %p802_p6, %p801_p5 }
 0x19a   : > { %p799_p4 = pneg %p798_p2 }
 0x19b   : > { %p805_p9 = por %p804_p12, %p803_p8 }
 0x19d   : > { %p806_p11 = pnand %p805_p9, %p799_p4 }
 0x19f   : > { %809 = shalt.err (!%p806_p11)
}
 0x1a0   : > { %s915_s22 = smov 128   ;;  %s916_s24 = smov 8  }
 0x1a1   : > { %613 = dma.vmem_to_hbm [thread:$0]  (%p1298_p3), %s1188_s5, 512, %s1193_s3, %s1197_s29, %s915_s22, %s915_s22, %s916_s24  }
 0x1a2 PF: > { %s1299_s26 = sld [smem:[#allocation12_spill]]  ;;  %s1300_s0 = sld [smem:[#allocation15_spill]] }
 0x1a3   : > { %p630_p1 = scmp.ge.s32.totalorder %s908_s19, 2 }
 0x1a8   : > { %s428_s6 = sand.u32 1, %s1299_s26   ;;  %p1301_p7 = scmp.ne.s32.totalorder %s1300_s0, 0 }
 0x1a9   : > { %s429_s28 = scalar_lea.sflag [#allocation5], %s428_s6 }
 0x1aa   : > { %p624_p13 = pnand %p630_p1, %p1301_p7 }
 0x1ac   : > { %863 = dma.done.wait (!%p624_p13), %s429_s28, 512  }
 0x1ad   : > { %865 = vsyncadd (!%p624_p13), %s429_s28, 4294966784  ;;  %s19_s19 = sadd.s32 1, %s908_s19   ;;  %s1302_s25 = sld [smem:[#allocation13_spill]] }
 0x1ae   : > { %p16_p10 = scmp.ge.s32.totalorder %s19_s19, 10   ;;  %s1303_s14 = sld [smem:[#allocation18_spill]] }
 0x1af   : > { %s1304_s15 = sld [smem:[#allocation14_spill]]  ;;  %s1305_s17 = sld [smem:[#allocation16_spill]] }
 0x1b0   : > { %s1306_s5 = sld [smem:[#allocation17_spill]]  ;;  %s1307_s9 = smov %s872_s10 }
 0x1b1   : > { %s1308_s10 = smov %s876_s11  ;;  %s1309_s11 = smov %s1082_s7 }
 0x1b2   : > { %s1310_s12 = smov %s884_s13  ;;  %s1312_s16 = smov %s904_s18 }
 0x1b3   : > { %s1311_s13 = smov %s1302_s25  ;;  %18 = sbr.rel (!%p16_p10) target bundleno = 12 (0xc), region = 98 }
 0x1b6   : > { %s1313_s18 = smov %s1306_s5 }
 0x1ba   :  { %434 = vsyncpa [#allocation4], 1 }
 0x1bb   :  { %436 = vsyncpa [#allocation4 + $0x1], 1 }
 0x1bc   :  { %437 = vsyncpa [#allocation7], 1 }
 0x1bd   :  { %439 = vsyncpa [#allocation7 + $0x1], 1 }
 0x1be   :  { %440 = vsyncpa [#allocation5], 1 }
 0x1bf   :  { %442 = vsyncpa [#allocation5 + $0x1], 1 }

</bundles_post_ra>
